<compile_context>
chip_gen: v6e
topology: v6e:2x2x1
jax: 0.10.0
libtpu: 0.0.40
codegen_flags: <defaults>
</compile_context>

<pallas_src>
import functools

import jax
import jax.numpy as jnp
from jax import lax
from jax.experimental import pallas as pl
from jax.experimental.pallas import tpu as pltpu


def _self_attn_kernel(xf_ref, xq_ref, wq_ref, bq_ref, wkv_ref, bkv_ref,
                      wma_ref, o_ref, *, c, qk_rows):
    x_full = xf_ref[0]                                              # (C, N)
    x_q = xq_ref[0]                                                 # (C, TQ)

    # K / V / ones projection over the full spatial extent.  Weights are
    # (Cout, Cin) -> plain A@B on the MXU.  The bias add also generates the
    # constant-ones row used for the softmax denominator below.
    kv = jnp.dot(wkv_ref[...], x_full,
                 preferred_element_type=jnp.float32) + bkv_ref[...]  # (8+C+1, N)
    k = kv[:qk_rows]                                                 # (8, N)  tile-aligned
    v1 = kv[qk_rows:]                                                # (C+1, N) v rows + ones row

    # Q projection over the current query tile only.
    q = jnp.dot(wq_ref[...], x_q,
                preferred_element_type=jnp.float32) + bq_ref[...]    # (8, TQ)

    # energy^T[m, n] = <k_m, q_n> : keys on sublanes, queries on lanes.
    # bf16 MXU operands, f32 accumulation.
    energy_t = lax.dot_general(
        k.astype(jnp.bfloat16), q.astype(jnp.bfloat16),
        (((0,), (0,)), ((), ())),
        preferred_element_type=jnp.float32)                          # (N, TQ)

    # Softmax over keys (axis 0).  p is emitted directly in bf16 (the
    # max-subtraction stays f32); normalization is deferred and the denominator
    # is produced by the PV matmul via the ones row of v1.
    e_max = jnp.max(energy_t, axis=0, keepdims=True)                 # (1, TQ)
    p = jnp.exp((energy_t - e_max).astype(jnp.bfloat16))             # (N, TQ) bf16

    pv_aug = jnp.dot(v1.astype(jnp.bfloat16), p,
                     preferred_element_type=jnp.float32)             # (C+1, TQ): [pv; sum_m p]
    inv_s = pl.reciprocal(pv_aug[c:c + 1], approx=True)              # (1, TQ), EUP

    # Mix conv (eval-mode BN folded).  The extra bias column multiplies the
    # denominator row, so (bias * s) * inv_s reproduces the unscaled bias.
    mixed = jnp.dot(wma_ref[...], pv_aug,
                    preferred_element_type=jnp.float32)              # (C, TQ)

    # Residual add; store is lane-dense (TQ is a multiple of 128 or == N).
    o_ref[0] = mixed * inv_s + x_q


def self_attn_pallas(x, params, *, tq=None):
    """x: (B, C, W, H) float32 -> (B, C, W, H) float32."""
    B, C, W, H = x.shape
    N = W * H
    if tq is None:
        tq = 128 if (N % 128 == 0 and N > 128) else N
    assert N % tq == 0, "query tile must divide N"

    # NCHW -> (B, C, N) is a pure reshape (no transpose, no extra HBM traffic).
    x_cn = x.reshape(B, C, N).astype(jnp.float32)

    w_q = params["w_q"]          # (8, C)        q weights, rows padded to 8
    b_q = params["b_q"]          # (8, 1)
    w_kv = params["w_kv"]        # (8 + C + 1, C) k (padded) + v + ones-generator
    b_kv = params["b_kv"]        # (8 + C + 1, 1)
    wm_aug = params["wm_aug"]    # (C, C + 1)    BN-folded mix weight + bias col
    qk_rows = int(params["qk_rows"])

    kernel = functools.partial(_self_attn_kernel, c=C, qk_rows=qk_rows)

    out_cn = pl.pallas_call(
        kernel,
        out_shape=jax.ShapeDtypeStruct((B, C, N), jnp.float32),
        grid=(B, N // tq),
        in_specs=[
            pl.BlockSpec((1, C, N), lambda b, qi: (b, 0, 0)),    # full x (K/V)
            pl.BlockSpec((1, C, tq), lambda b, qi: (b, 0, qi)),  # query tile of x
            pl.BlockSpec(w_q.shape, lambda b, qi: (0, 0)),
            pl.BlockSpec(b_q.shape, lambda b, qi: (0, 0)),
            pl.BlockSpec(w_kv.shape, lambda b, qi: (0, 0)),
            pl.BlockSpec(b_kv.shape, lambda b, qi: (0, 0)),
            pl.BlockSpec(wm_aug.shape, lambda b, qi: (0, 0)),
        ],
        out_specs=pl.BlockSpec((1, C, tq), lambda b, qi: (b, 0, qi)),
        compiler_params=pltpu.CompilerParams(
            dimension_semantics=("parallel", "parallel")),
    )(x_cn, x_cn, w_q, b_q, w_kv, b_kv, wm_aug)

    # (B, C, N) -> NCHW: again a pure reshape.
    return out_cn.reshape(B, C, W, H)


def self_attn_reference(x, params):
    """Plain-JAX f32 reference of the module's forward pass."""
    B, C, W, H = x.shape
    N = W * H
    xf = x.reshape(B, C, N)

    def conv1x1(w, b, t):        # w: (Cout, Cin), b: (Cout,), t: (B, Cin, N)
        return jnp.einsum("oc,bcn->bon", w, t) + b[None, :, None]

    q = conv1x1(params["wq"], params["bq"], xf)          # (B, C8, N)
    k = conv1x1(params["wk"], params["bk"], xf)          # (B, C8, N)
    v = conv1x1(params["wv"], params["bv"], xf)          # (B, C,  N)
    energy = jnp.einsum("bcn,bcm->bnm", q, k)            # energy[b, n, m]
    attn = jax.nn.softmax(energy, axis=-1)
    out = jnp.einsum("bcm,bnm->bcn", v, attn)
    mixed = conv1x1(params["wm"], params["bm"], out)
    y = mixed * params["scale"][None, :, None] + params["shift"][None, :, None]
    return (y + xf).reshape(B, C, W, H)


def init_params(key, in_dim, bn_gamma_value=0.0):
    """Deterministic parameter init mirroring the module's shapes.

    Conv2d(k=1) weights are kept in natural (Cout, Cin) layout.  bn.weight /
    bn.bias default to 0.0 as in the module's __init__.  Host-side packing:
    q/k padded to 8 output channels, K/V fused with a ones-generator row,
    eval-mode BN folded into the mix conv, mix bias packed as an extra column.
    """
    C = in_dim
    C8 = max(in_dim // 8, 1)
    ks = jax.random.split(key, 8)

    def conv_init(kw, kb, cin, cout):
        bound = 1.0 / jnp.sqrt(jnp.float32(cin))
        w = jax.random.uniform(kw, (cout, cin), jnp.float32, -bound, bound)
        b = jax.random.uniform(kb, (cout,), jnp.float32, -bound, bound)
        return w, b

    wq, bq = conv_init(ks[0], ks[1], C, C8)
    wk, bk = conv_init(ks[2], ks[3], C, C8)
    wv, bv = conv_init(ks[4], ks[5], C, C)
    wm, bm = conv_init(ks[6], ks[7], C, C)

    # BatchNorm2d (eval mode, fresh running stats) folded to scale/shift.
    gamma = jnp.full((C,), bn_gamma_value, jnp.float32)
    beta = jnp.zeros((C,), jnp.float32)
    running_mean = jnp.zeros((C,), jnp.float32)
    running_var = jnp.ones((C,), jnp.float32)
    eps = 1e-5
    scale = gamma / jnp.sqrt(running_var + eps)
    shift = beta - running_mean * scale

    # ---- kernel-side packing ------------------------------------------------
    qk_rows = -(-C8 // 8) * 8            # pad q/k out-channels to a sublane tile

    def pad_rows(w, b, rows):
        pad = rows - w.shape[0]
        return jnp.pad(w, ((0, pad), (0, 0))), jnp.pad(b, ((0, pad),))

    wq_p, bq_p = pad_rows(wq, bq, qk_rows)
    wk_p, bk_p = pad_rows(wk, bk, qk_rows)

    # K/V pack + one zero-weight / bias-1 row emitting a constant-ones row, so
    # the PV matmul also produces the softmax denominator.
    w_kv = jnp.concatenate([wk_p, wv, jnp.zeros((1, C), jnp.float32)], axis=0)
    b_kv = jnp.concatenate([bk_p, bv, jnp.ones((1,), jnp.float32)], axis=0)[:, None]

    w_q = wq_p
    b_q = bq_p[:, None]

    # Mix conv with eval-mode BN folded in; bias packed as an extra column that
    # multiplies the denominator row (cancels against the deferred 1/s scale).
    wm_folded = wm * scale[:, None]
    bm_folded = bm * scale + shift
    wm_aug = jnp.concatenate([wm_folded, bm_folded[:, None]], axis=1)   # (C, C+1)

    return dict(
        # packed / folded (used by the Pallas kernel)
        w_q=w_q, b_q=b_q, w_kv=w_kv, b_kv=b_kv, wm_aug=wm_aug, qk_rows=qk_rows,
        # raw (used by the plain-JAX reference)
        wq=wq, bq=bq, wk=wk, bk=bk, wv=wv, bv=bv, wm=wm, bm=bm,
        scale=scale, shift=shift)


if __name__ == "__main__":
    key = jax.random.PRNGKey(0)
    k_x, k_p = jax.random.split(key)

    B, C, W, H = 2, 32, 16, 16          # in_dim must be divisible by 8
    x = jax.random.normal(k_x, (B, C, W, H), jnp.float32)

    # 1) Module-faithful init (bn.weight = bn.bias = 0  =>  output == x exactly,
    #    regardless of matmul precision, since the BN-scaled branch is zero).
    params0 = init_params(k_p, C, bn_gamma_value=0.0)
    out0 = jax.block_until_ready(self_attn_pallas(x, params0))
    ref0 = self_attn_reference(x, params0)
    assert out0.shape == (B, C, W, H)
    assert jnp.allclose(out0, ref0, atol=1e-5, rtol=1e-5)

    # 2) Non-zero BN scale exercises the attention / softmax / conv path.
    #    bf16 MXU operands + bf16 p + approx reciprocal => loosened tolerance
    #    versus the full-f32 reference.
    params1 = init_params(k_p, C, bn_gamma_value=1.0)
    out1 = jax.block_until_ready(self_attn_pallas(x, params1))
    ref1 = self_attn_reference(x, params1)
    assert jnp.allclose(out1, ref1, atol=5e-2, rtol=5e-2)

    print("KERNEL_OK")
</pallas_src>

<mosaic_0001>
module attributes {stable_mosaic.version = 11 : i64} {
  func.func @_self_attn_kernel(%arg0: i32, %arg1: i32, %arg2: memref<1x32x256xf32, #tpu.memory_space<vmem>>, %arg3: memref<1x32x128xf32, #tpu.memory_space<vmem>>, %arg4: memref<8x32xf32, #tpu.memory_space<vmem>>, %arg5: memref<8x1xf32, #tpu.memory_space<vmem>>, %arg6: memref<41x32xf32, #tpu.memory_space<vmem>>, %arg7: memref<41x1xf32, #tpu.memory_space<vmem>>, %arg8: memref<32x33xf32, #tpu.memory_space<vmem>>, %arg9: memref<1x32x128xf32, #tpu.memory_space<vmem>>) attributes {dimension_semantics = [#tpu.dimension_semantics<parallel>, #tpu.dimension_semantics<parallel>], iteration_bounds = array<i64: 2, 2>, scalar_prefetch = 0 : i64, scratch_operands = 0 : i64, tpu.core_type = #tpu.core_type<tc>, window_params = [{transform_indices = @transform_0, window_bounds = array<i64: 1, 32, 256>}, {transform_indices = @transform_1, window_bounds = array<i64: 1, 32, 128>}, {pipeline_mode = #tpu.pipeline_mode<synchronous>, transform_indices = @transform_2, window_bounds = array<i64: 8, 32>}, {pipeline_mode = #tpu.pipeline_mode<synchronous>, transform_indices = @transform_3, window_bounds = array<i64: 8, 1>}, {pipeline_mode = #tpu.pipeline_mode<synchronous>, transform_indices = @transform_4, window_bounds = array<i64: 41, 32>}, {pipeline_mode = #tpu.pipeline_mode<synchronous>, transform_indices = @transform_5, window_bounds = array<i64: 41, 1>}, {pipeline_mode = #tpu.pipeline_mode<synchronous>, transform_indices = @transform_6, window_bounds = array<i64: 32, 33>}, {transform_indices = @transform_7, window_bounds = array<i64: 1, 32, 128>}]} {
    %c0 = arith.constant 0 : index
    %c0_0 = arith.constant 0 : index
    %c0_1 = arith.constant 0 : index
    %0 = vector.load %arg2[%c0, %c0_0, %c0_1] : memref<1x32x256xf32, #tpu.memory_space<vmem>>, vector<1x32x256xf32>
    %1 = vector.shape_cast %0 : vector<1x32x256xf32> to vector<32x256xf32>
    %c0_2 = arith.constant 0 : index
    %c0_3 = arith.constant 0 : index
    %c0_4 = arith.constant 0 : index
    %2 = vector.load %arg3[%c0_2, %c0_3, %c0_4] : memref<1x32x128xf32, #tpu.memory_space<vmem>>, vector<1x32x128xf32>
    %3 = vector.shape_cast %2 : vector<1x32x128xf32> to vector<32x128xf32>
    %c0_5 = arith.constant 0 : index
    %c0_6 = arith.constant 0 : index
    %4 = vector.load %arg6[%c0_5, %c0_6] : memref<41x32xf32, #tpu.memory_space<vmem>>, vector<41x32xf32>
    %cst = arith.constant dense<0.000000e+00> : vector<41x256xf32>
    %5 = tpu.matmul %4, %1, %cst {dimension_numbers = #tpu.dot_dimension_numbers<[1], [0], [0], [1], [0, 0, 1, 1], [], []>} : vector<41x32xf32>, vector<32x256xf32>, vector<41x256xf32> -> vector<41x256xf32>
    %c0_7 = arith.constant 0 : index
    %c0_8 = arith.constant 0 : index
    %6 = vector.load %arg7[%c0_7, %c0_8] : memref<41x1xf32, #tpu.memory_space<vmem>>, vector<41x1xf32>
    %7 = vector.broadcast %6 : vector<41x1xf32> to vector<41x256xf32>
    %8 = arith.addf %5, %7 : vector<41x256xf32>
    %9 = vector.extract_strided_slice %8 {offsets = [0, 0], sizes = [8, 256], strides = [1, 1]} : vector<41x256xf32> to vector<8x256xf32>
    %10 = vector.extract_strided_slice %8 {offsets = [8, 0], sizes = [33, 256], strides = [1, 1]} : vector<41x256xf32> to vector<33x256xf32>
    %c0_9 = arith.constant 0 : index
    %c0_10 = arith.constant 0 : index
    %11 = vector.load %arg4[%c0_9, %c0_10] : memref<8x32xf32, #tpu.memory_space<vmem>>, vector<8x32xf32>
    %cst_11 = arith.constant dense<0.000000e+00> : vector<8x128xf32>
    %12 = tpu.matmul %11, %3, %cst_11 {dimension_numbers = #tpu.dot_dimension_numbers<[1], [0], [0], [1], [0, 0, 1, 1], [], []>} : vector<8x32xf32>, vector<32x128xf32>, vector<8x128xf32> -> vector<8x128xf32>
    %c0_12 = arith.constant 0 : index
    %c0_13 = arith.constant 0 : index
    %13 = vector.load %arg5[%c0_12, %c0_13] : memref<8x1xf32, #tpu.memory_space<vmem>>, vector<8x1xf32>
    %14 = vector.broadcast %13 : vector<8x1xf32> to vector<8x128xf32>
    %15 = arith.addf %12, %14 : vector<8x128xf32>
    %16 = arith.truncf %9 : vector<8x256xf32> to vector<8x256xbf16>
    %17 = arith.truncf %15 : vector<8x128xf32> to vector<8x128xbf16>
    %cst_14 = arith.constant dense<0.000000e+00> : vector<256x128xf32>
    %18 = tpu.matmul %16, %17, %cst_14 {dimension_numbers = #tpu.dot_dimension_numbers<[0], [0], [1], [1], [0, 1, 1, 1], [], []>} : vector<8x256xbf16>, vector<8x128xbf16>, vector<256x128xf32> -> vector<256x128xf32>
    %cst_15 = arith.constant dense<0xFF800000> : vector<128xf32>
    %19 = vector.multi_reduction <maximumf>, %18, %cst_15 [0] : vector<256x128xf32> to vector<128xf32>
    %20 = vector.shape_cast %19 : vector<128xf32> to vector<1x128xf32>
    %21 = vector.broadcast %20 : vector<1x128xf32> to vector<256x128xf32>
    %22 = arith.subf %18, %21 : vector<256x128xf32>
    %23 = arith.truncf %22 : vector<256x128xf32> to vector<256x128xbf16>
    %24 = math.exp %23 : vector<256x128xbf16>
    %25 = arith.truncf %10 : vector<33x256xf32> to vector<33x256xbf16>
    %cst_16 = arith.constant dense<0.000000e+00> : vector<33x128xf32>
    %26 = tpu.matmul %25, %24, %cst_16 {dimension_numbers = #tpu.dot_dimension_numbers<[1], [0], [0], [1], [0, 0, 1, 1], [], []>} : vector<33x256xbf16>, vector<256x128xbf16>, vector<33x128xf32> -> vector<33x128xf32>
    %27 = vector.extract_strided_slice %26 {offsets = [32, 0], sizes = [1, 128], strides = [1, 1]} : vector<33x128xf32> to vector<1x128xf32>
    %28 = tpu.reciprocal %27 {approx = true} : vector<1x128xf32> -> vector<1x128xf32>
    %c0_17 = arith.constant 0 : index
    %c0_18 = arith.constant 0 : index
    %29 = vector.load %arg8[%c0_17, %c0_18] : memref<32x33xf32, #tpu.memory_space<vmem>>, vector<32x33xf32>
    %cst_19 = arith.constant dense<0.000000e+00> : vector<32x128xf32>
    %30 = tpu.matmul %29, %26, %cst_19 {dimension_numbers = #tpu.dot_dimension_numbers<[1], [0], [0], [1], [0, 0, 1, 1], [], []>} : vector<32x33xf32>, vector<33x128xf32>, vector<32x128xf32> -> vector<32x128xf32>
    %31 = vector.broadcast %28 : vector<1x128xf32> to vector<32x128xf32>
    %32 = arith.mulf %30, %31 : vector<32x128xf32>
    %33 = arith.addf %32, %3 : vector<32x128xf32>
    %c0_20 = arith.constant 0 : index
    %c0_21 = arith.constant 0 : index
    %c0_22 = arith.constant 0 : index
    %34 = vector.load %arg9[%c0_20, %c0_21, %c0_22] : memref<1x32x128xf32, #tpu.memory_space<vmem>>, vector<1x32x128xf32>
    %35 = vector.shape_cast %34 : vector<1x32x128xf32> to vector<32x128xf32>
    %36 = vector.shape_cast %33 : vector<32x128xf32> to vector<1x32x128xf32>
    tpu.vector_store %arg9[%c0_20, %c0_21, %c0_22], %36 {strides = array<i32>} : memref<1x32x128xf32, #tpu.memory_space<vmem>>, vector<1x32x128xf32>,
    return
  }
  func.func @transform_0(%arg0: i32, %arg1: i32) -> (i32, i32, i32) {
    %c0_i32 = arith.constant 0 : i32
    %c0_i32_0 = arith.constant 0 : i32
    %c0_i32_1 = arith.constant 0 : i32
    return %arg0, %c0_i32, %c0_i32_0 : i32, i32, i32
  }
  func.func @transform_1(%arg0: i32, %arg1: i32) -> (i32, i32, i32) {
    %c0_i32 = arith.constant 0 : i32
    %c0_i32_0 = arith.constant 0 : i32
    return %arg0, %c0_i32, %arg1 : i32, i32, i32
  }
  func.func @transform_2(%arg0: i32, %arg1: i32) -> (i32, i32) {
    %c0_i32 = arith.constant 0 : i32
    %c0_i32_0 = arith.constant 0 : i32
    %c0_i32_1 = arith.constant 0 : i32
    return %c0_i32, %c0_i32_0 : i32, i32
  }
  func.func @transform_3(%arg0: i32, %arg1: i32) -> (i32, i32) {
    %c0_i32 = arith.constant 0 : i32
    %c0_i32_0 = arith.constant 0 : i32
    %c0_i32_1 = arith.constant 0 : i32
    return %c0_i32, %c0_i32_0 : i32, i32
  }
  func.func @transform_4(%arg0: i32, %arg1: i32) -> (i32, i32) {
    %c0_i32 = arith.constant 0 : i32
    %c0_i32_0 = arith.constant 0 : i32
    %c0_i32_1 = arith.constant 0 : i32
    return %c0_i32, %c0_i32_0 : i32, i32
  }
  func.func @transform_5(%arg0: i32, %arg1: i32) -> (i32, i32) {
    %c0_i32 = arith.constant 0 : i32
    %c0_i32_0 = arith.constant 0 : i32
    %c0_i32_1 = arith.constant 0 : i32
    return %c0_i32, %c0_i32_0 : i32, i32
  }
  func.func @transform_6(%arg0: i32, %arg1: i32) -> (i32, i32) {
    %c0_i32 = arith.constant 0 : i32
    %c0_i32_0 = arith.constant 0 : i32
    %c0_i32_1 = arith.constant 0 : i32
    return %c0_i32, %c0_i32_0 : i32, i32
  }
  func.func @transform_7(%arg0: i32, %arg1: i32) -> (i32, i32, i32) {
    %c0_i32 = arith.constant 0 : i32
    %c0_i32_0 = arith.constant 0 : i32
    return %arg0, %c0_i32, %arg1 : i32, i32, i32
  }
}

</mosaic_0001>

<bundles_post_ra>
// kernel: tpu_custom_call.1
= control target key start
LH: loop header
LB: loop body
LE: loop exit
PB: predicated region body
PF: predicated region fallthrough
CT: control target
= control target key end

     0   :  { %s2273_s0 = inlined_call_operand.vmem [shape: f32[2,32,256], index: 0, kind: input, shape index: {}]   ;;  %s2274_s1 = inlined_call_operand.hbm [shape: f32[2,32,256], index: 1, kind: input, shape index: {}]   ;;  %s2275_s2 = inlined_call_operand.vmem [shape: f32[8,32], index: 2, kind: input, shape index: {}]   ;;  %s2276_s3 = inlined_call_operand.vmem [shape: f32[8,1], index: 3, kind: input, shape index: {}]   ;;  %s2277_s4 = inlined_call_operand.vmem [shape: f32[41,32], index: 4, kind: input, shape index: {}]   ;;  %s2278_s5 = inlined_call_operand.vmem [shape: f32[41,1], index: 5, kind: input, shape index: {}]   ;;  %s2279_s6 = inlined_call_operand.hbm [shape: f32[32,33], index: 6, kind: input, shape index: {}]   ;;  %s2280_s7 = inlined_call_operand.hbm [shape: f32[2,32,256], index: 7, kind: output, shape index: {}]  }
   0x1   :  { %2295 = sst [smem:[#allocation18_spill]] %s2279_s6 }
   0x2   :  { %2296 = sst [smem:[#allocation19_spill]] %s2280_s7 }
   0x3   :  { %12 = vsyncpa [#allocation3], 0 }
   0x4   :  { %14 = vsyncpa [#allocation3 + $0x1], 0 }
   0x5   :  { %15 = vsyncpa [#allocation6], 0 }
   0x6   :  { %16 = vsyncpa [#allocation4], 0 }
   0x7   :  { %18 = vsyncpa [#allocation4 + $0x1], 0  ;;  %s1812_s24 = smov 0   ;;  %s1814_s25 = smov 0  }
   0x8   :  { %s1816_s26 = smov 0   ;;  %s1818_s27 = smov 0  }
   0x9   :  { %s1820_s28 = smov 0   ;;  %s1822_s29 = smov 0  }
   0xa   :  { %s1824_s30 = smov 0   ;;  %s1826_s8 = smov 0  }
   0xb LB: > { %2297 = sst [smem:[#allocation11_spill]] %s1730_s24  ;;  %s1296_s9 = sadd.s32 4294967295, %s1758_s8   ;;  %s1758_s8 = sphi %s1826_s8, %s24_s8   ;;  %s1754_s30 = sphi %s1824_s30, %s2332_s30   ;;  %s1750_s29 = sphi %s1822_s29, %s2327_s29   ;;  %s1746_s28 = sphi %s1820_s28, %s2331_s28   ;;  %s1742_s27 = sphi %s1818_s27, %s2326_s27   ;;  %s1738_s26 = sphi %s1816_s26, %s2330_s26   ;;  %s1734_s25 = sphi %s1814_s25, %s2329_s25   ;;  %s1730_s24 = sphi %s1812_s24, %s2328_s24  }
   0xc   : > { %2298 = sst [smem:[#allocation12_spill]] %s1742_s27  ;;  %s1297_s10 = sadd.s32 4294967294, %s1758_s8  }
   0xd   : > { %2299 = sst [smem:[#allocation13_spill]] %s1750_s29  ;;  %p78_p0 = scmp.ne.s32.totalorder %s1738_s26, %s1734_s25 }
   0xe   : > { %2300 = sst [smem:[#allocation14_spill]] %s1758_s8  ;;  %p79_p1 = scmp.eq.s32.totalorder %s1758_s8, 0 }
   0xf   : > { %p84_p2 = scmp.ne.s32.totalorder %s1734_s25, %s1730_s24  ;;  %p1860_p3 = scmp.eq.s32.totalorder %s1296_s9, 0 }
  0x10   : > { %p215_p4 = scmp.eq.s32.totalorder %s1296_s9, 3  ;;  %p1864_p5 = por %p79_p1, %p78_p0 }
  0x11   : > { %p221_p6 = scmp.eq.s32.totalorder %s1297_s10, 3  ;;  %p1870_p7 = por %p1860_p3, %p84_p2 }
  0x12   : > { %p1874_p8 = por %p215_p4, %p78_p0  ;;  %p1298_p10 = scmp.ge.s32.totalorder %s1758_s8, 1 }
  0x13   : > { %s2303_s14 = scalar_select %p1870_p7, 1, 0 }
  0x14   : > { %s2304_s15 = scalar_select %p1874_p8, 1, 0 }
  0x15   : > { %p1878_p9 = por %p221_p6, %p84_p2  ;;  %p228_p11 = scmp.lt.s32.totalorder %s1758_s8, 5 }
  0x16   : > { %2305 = sst [smem:[#allocation15_spill]] %s2304_s15  ;;  %s1760_s18 = smov [#allocation5]  }
  0x17   : > { %s2306_s16 = scalar_select %p1878_p9, 1, 0 }
  0x18   : > { %p1884_p12 = pnand %p1298_p10, %p228_p11  ;;  %s252_s19 = sshll.u32 %s1760_s18, 4  ;;  %s253_s19 = int_to_ptr.vmem [resolvable:$true] %s252_s19 }
  0x19   : > { %2307 = sst [smem:[#allocation16_spill]] %s2306_s16  ;;  %p1492_p0 = scmp.lt.s32.totalorder %s1758_s8, 4 }
  0x1a   : > { %s2308_s17 = scalar_select %p1884_p12, 1, 0 }
  0x1b   : > { %p1479_p13 = pneg %p1884_p12  ;;  %p1899_p2 = pnand %p1492_p0, %p1864_p5 }
  0x1c   : > { %s1615_s22 = scalar_lea.vmem %s253_s19, 512  ;;  %p1623_p9 = scmp.lt.s32.totalorder %s253_s19, %s253_s19 }
  0x1d   : > { %p1893_p1 = pnand %p1479_p13, %p1860_p3  ;;  %p1616_p6 = scmp.ne.s32.totalorder %s253_s19, %s1615_s22 }
  0x1e   : > { %p1624_p8 = scmp.lt.s32.totalorder %s1615_s22, %s1615_s22 }
  0x1f   : > { %p1606_p4 = pneg %p1893_p1 }
  0x20   : > { %p1625_p7 = por %p1624_p8, %p1623_p9 }
  0x21   : > { %p1618_p10 = pnand %p1616_p6, %p1606_p4 }
  0x23   : > { %p1619_p11 = pneg %p1618_p10 }
  0x25   : > { %p1626_p12 = pnand %p1625_p7, %p1619_p11 }
  0x27   : > { %1629 = shalt.err (!%p1626_p12)
}
  0x28   : > { %s2288_s23 = smov 128   ;;  %s2289_s9 = smov 8  }
  0x29   : > { %s2311_s6 = sld [smem:[#allocation18_spill]]  ;;  %s33_s18 = sadd.s32 1, %s1750_s29 }
  0x2a   : > { %p34_p5 = scmp.ge.s32.totalorder %s33_s18, 2  ;;  %s36_s22 = sadd.s32 1, %s1754_s30 }
  0x2b   : > { %s274_s11 = sand.u32 1, %s1738_s26   ;;  %s1302_s16 = sshll.u32 %s1754_s30, 3 }
  0x2c   : > { %s2334_s18 = smov (%p34_p5, %s33_s18), 0  ;;  %s2336_s22 = smov (!%p34_p5, %s36_s22), %s1754_s30 }
  0x2d   : > { %2312 = sst [smem:[#allocation17_spill]] %s2334_s18  ;;  %s67_s24 = ssub.s32 %s1750_s29, %s2334_s18 }
  0x2e   : > { %p38_p7 = scmp.ge.s32.totalorder %s2336_s22, 2  ;;  %s1301_s20 = sshll.u32 %s274_s11, 5 }
  0x2f   : > { %1482 = dma.hbm_to_vmem [thread:$0]  (!%p1893_p1), %s2311_s6, 512, %s253_s19, [#allocation6], %s2288_s23, %s2288_s23, %s2289_s9  }
  0x30   : > { %s283_s8 = sadd.s32 %s1750_s29, %s1302_s16  ;;  %s2338_s22 = smov (%p38_p7, %s2336_s22), 0 }
  0x31   : > { %s1303_s10 = sshll.u32 %s283_s8, 7  ;;  %s278_s19 = scalar_lea.vmem [#allocation2], %s1301_s20 }
  0x32   : > { %s286_s13 = sshll.u32 %s278_s19, 4  ;;  %s66_s23 = ssub.s32 %s1754_s30, %s2338_s22  ;;  %s287_s13 = int_to_ptr.vmem [resolvable:$true] %s286_s13 }
  0x33   : > { %s285_s7 = scalar_lea.hbm %s2274_s1, %s1303_s10  ;;  %s68_s15 = sor.u32 %s67_s24, %s66_s23 }
  0x34   : > { %p69_p8 = scmp.eq.s32.totalorder %s68_s15, 0  ;;  %s275_s27 = scalar_lea.sflag [#allocation3], %s274_s11 }
  0x35   : > { %p1632_p9 = pneg %p1899_p2  ;;  %s1643_s18 = scalar_lea.vmem %s287_s13, 512 }
  0x36   : > { %p1644_p12 = scmp.ne.s32.totalorder %s287_s13, %s1643_s18  ;;  %s1763_s16 = smov [#allocation2]  }
  0x37   : > { %s1648_s29 = sshll.u32 %s1763_s16, 4  ;;  %s1649_s29 = int_to_ptr.vmem [resolvable:$false] %s1648_s29 }
  0x38   : > { %p1646_p13 = pnand %p1644_p12, %p1632_p9  ;;  %s1650_s8 = scalar_lea.vmem %s1649_s29, 1024 }
  0x39   : > { %p1651_p1 = scmp.lt.s32.totalorder %s287_s13, %s1649_s29  ;;  %p1652_p4 = scmp.lt.s32.totalorder %s1650_s8, %s1643_s18 }
  0x3a   : > { %p1647_p0 = pneg %p1646_p13 }
  0x3b   : > { %p1653_p6 = por %p1652_p4, %p1651_p1 }
  0x3d   : > { %p1654_p10 = pnand %p1653_p6, %p1647_p0 }
  0x3f   : > { %1657 = shalt.err (!%p1654_p10)
}
  0x40   : > { %s1764_s6 = smov 256   ;;  %s2313_s24 = smov 8  }
  0x41   : > { %s2314_s11 = smov 128   ;;  %s2315_s23 = sadd.s32 1, %s1738_s26 }
  0x42   : > { %1486 = dma.hbm_to_vmem [thread:$0]  (!%p1899_p2), %s285_s7, 512, %s287_s13, %s275_s27, %s1764_s6, %s2314_s11, %s2313_s24  }
  0x43   : > { %s1940_s9 = scalar_select %p69_p8, %s1738_s26, %s2315_s23  }
  0x44   : > { %p2316_p11 = scmp.ne.s32.totalorder %s2308_s17, 0 }
  0x45   : > { %s1945_s29 = sand.u32 (!%p2316_p11), 1, %s1734_s25   ;;  %p2317_p2 = scmp.ne.s32.totalorder (!%p2316_p11), %s2303_s14, 0 }
  0x46   : > { %298 = sbr.rel (%p2316_p11) target bundleno = 1162 (0x48a), region = 48  ;;  %s1305_s21 = sshll.u32 (!%p2316_p11), %s1945_s29, 5 }
  0x47   : > { %s301_s18 = scalar_lea.sflag (!%p2316_p11), [#allocation3], %s1945_s29  ;;  %s1951_s20 = scalar_lea.vmem (!%p2316_p11), [#allocation2], %s1305_s21 }
  0x4b   : > { %1717 = dma.done.wait (%p2317_p2), %s301_s18, 512  }
  0x4c   : > { %1719 = vsyncadd (%p2317_p2), %s301_s18, 4294966784 }
  0x4d   : > { %1721 = dma.done.wait (%p1860_p3), [#allocation6], 512  }
  0x4e   : > { %1723 = vsyncadd (%p1860_p3), [#allocation6], 4294966784  ;;  %p344_p5 = scmp.lt.s32.totalorder %s1746_s28, 1  ;;  %v1765_v0 = vmov 0.0   ;;  %vm1766_vm0 = vmmov 0   ;;  %v1767_v1 = vmov 0  }
  0x4f   : > { %1409 = vmatprep.subr.mxu1 %v1765_v0  ;;  %487 = vmatprep.mubr.f32.mxu0 %v1765_v0  ;;  %v1970_v4 = vld [vmem:[%s1951_s20 + $0x18] sm:$0xff]  ;;  %v1974_v7 = vld [vmem:[%s1951_s20 + $0x10] sm:$0xff]  ;;  %v1978_v9 = vld [vmem:[%s1951_s20 + $0x8] sm:$0xff]  ;;  %vm404_vm1 = vcmask 261120   ;;  %vm688_vm2 = vcmask 1043456   ;;  %vm639_vm3 = vcmask 64512  }
  0x50   : > { %s345_s7 = scalar_select %p344_p5, %s1746_s28, 1  ;;  %1417 = vmatprep.mubr.msk.f32.mxu1 %vm1766_vm0, %v1765_v0  ;;  %1569 = vset.pattern.permute.xlu0 %v1767_v1  ;;  %v1983_v12 = vld [vmem:[%s1951_s20] sm:$0xff]  ;;  %v363_v17 = vld [vmem:[%s2277_s4 + $0x8] sm:$0xff]  ;;  %v364_v19 = vld [vmem:[%s2277_s4 + $0x10] sm:$0xff]  ;;  %vm1053_vm4 = vcmask 269312   ;;  %vm1066_vm5 = vcmask 1040384  }
  0x51   : > { %1410 = vmatpush3.msra.mxu1 %v1970_v4  ;;  %v524_v14 = vld [vmem:[%s2275_s2] sm:$0xff]  ;;  %v369_v20 = vld [vmem:[%s2278_s5 + $0x8] sm:$0xff]  ;;  %v365_v21 = vld [vmem:[%s2277_s4 + $0x18] sm:$0xff]  ;;  %s2318_s20 = sld [smem:[#allocation12_spill]]  ;;  %s343_s12 = scalar_lea.vmem [#allocation7], %s1305_s21 }
  0x52   : > { %s1343_s27 = sshll.u32 %s345_s7, 6  ;;  %1411 = vmatprep.subr.mxu1 %v1765_v0  ;;  %v362_v15 = vld [vmem:[%s2277_s4] sm:$0xff]  ;;  %v370_v22 = vld [vmem:[%s2278_s5 + $0x10] sm:$0xff]  ;;  %v371_v24 = vld [vmem:[%s2278_s5 + $0x18] sm:$0xff]  ;;  %s1339_s7 = sshll.u32 %s1746_s28, 3 }
  0x53   : > { %s348_s15 = scalar_lea.vmem %s2273_s0, %s1343_s27  ;;  %1412 = vmatpush3.msra.mxu1 %v1974_v7  ;;  %v368_v16 = vld [vmem:[%s2278_s5] sm:$0xff]  ;;  %v367_v25 = vld [vmem:[%s2277_s4 + $0x28] sm:$0x1]  ;;  %s1186_s14 = sshll.u32 %s343_s12, 4  ;;  %s2213_s14 = int_to_ptr.vmem [resolvable:$true] %s1186_s14 }
  0x54   : > { %v357_v2 = vld [vmem:[%s348_s15 + $0x38] sm:$0xff]  ;;  %v356_v3 = vld [vmem:[%s348_s15 + $0x30] sm:$0xff]  ;;  %v355_v5 = vld [vmem:[%s348_s15 + $0x28] sm:$0xff]  ;;  %1413 = vmatprep.subr.mxu1 %v1765_v0  ;;  %376 = vperm.xlu0 %1569, %v368_v16   ;;  %s2320_s10 = sld [smem:[#allocation19_spill]]  ;;  %s1172_s13 = scalar_lea.sflag [#allocation4], %s1945_s29 }
  0x55   : > { %447 = vmatprep.subr.mxu0 %v357_v2  ;;  %v354_v6 = vld [vmem:[%s348_s15 + $0x20] sm:$0xff]  ;;  %v353_v8 = vld [vmem:[%s348_s15 + $0x18] sm:$0xff]  ;;  %v352_v10 = vld [vmem:[%s348_s15 + $0x10] sm:$0xff]  ;;  %1414 = vmatpush3.msra.mxu1 %v1978_v9  ;;  %s1658_s16 = scalar_lea.vmem %s2213_s14, 512  ;;  %s1768_s8 = smov [#allocation7]  }
  0x56   : > { %448 = vmatpush1.msra.mxu0 %v356_v3  ;;  %v351_v11 = vld [vmem:[%s348_s15 + $0x8] sm:$0xff]  ;;  %v350_v13 = vld [vmem:[%s348_s15] sm:$0xff]  ;;  %1415 = vmatprep.subr.mxu1 %v1765_v0  ;;  %s2319_s15 = sld [smem:[#allocation15_spill]]  ;;  %p1659_p3 = scmp.ne.s32.totalorder %s2213_s14, %s1658_s16 }
  0x57   : > { %449 = vmatprep.subr.mxu0 %v355_v5  ;;  %1416 = vmatpush3.msra.mxu1 %v1983_v12  ;;  %v525_v18 = vld [vmem:[%s2276_s3] sm:$0xff]  ;;  %v373_v27 = vld [vmem:[%s2278_s5 + $0x28] sm:$0x1]  ;;  %s1183_s27 = sadd.s32 %s2318_s20, %s1339_s7  ;;  %s1662_s6 = sshll.u32 %s1768_s8, 4  ;;  %s1663_s6 = int_to_ptr.vmem [resolvable:$false] %s1662_s6 }
  0x58   : > { %450 = vmatpush1.msra.mxu0 %v354_v6  ;;  %1418 = vmatmul.mubr.msk.f32.vlgmr.msra.gmra.mxu1 %vm404_vm1, %v524_v14  ;;  %v366_v23 = vld [vmem:[%s2277_s4 + $0x20] sm:$0xff]  ;;  %s1340_s17 = sshll.u32 %s1183_s27, 7  ;;  %s1664_s24 = scalar_lea.vmem %s1663_s6, 1024 }
  0x59   : > { %451 = vmatprep.subr.mxu0 %v353_v8  ;;  %528 = vperm.xlu0 %1569, %v525_v18   ;;  %v372_v26 = vld [vmem:[%s2278_s5 + $0x20] sm:$0xff]  ;;  %p1665_p12 = scmp.lt.s32.totalorder %s2213_s14, %s1663_s6  ;;  %p1666_p13 = scmp.lt.s32.totalorder %s1664_s24, %s1658_s16 }
  0x5a   : > { %452 = vmatpush1.msra.mxu0 %v352_v10  ;;  %s2219_s19 = scalar_lea.hbm %s2320_s10, %s1340_s17 }
  0x5b   : > { %453 = vmatprep.subr.mxu0 %v351_v11  ;;  %p1667_p0 = por %p1666_p13, %p1665_p12 }
  0x5c   : > { %454 = vmatpush1.msra.mxu0 %v350_v13  ;;  %p2321_p7 = scmp.ne.s32.totalorder %s2319_s15, 0 }
  0x5d   : > { %1310 = vmatmul.mubr.msk.f32.vlgmr.msra.gmra.mxu0 %vm404_vm1, %v362_v15  ;;  %381 = vperm.xlu0 %1569, %v369_v20  }
  0x5e   : > { %493 = vmatprep.mubr.f32.mxu0 %v1765_v0  ;;  %p1660_p8 = pnand %p1659_p3, %p2321_p7 }
  0x60   : > { %p1661_p9 = pneg %p1660_p8 }
  0x61   : > { %1311 = vmatmul.mubr.msk.f32.gmra.mxu0 %vm404_vm1, %v363_v17  ;;  %386 = vperm.xlu0 %1569, %v370_v22  }
  0x62   : > { %499 = vmatprep.mubr.f32.mxu0 %v1765_v0  ;;  %p1668_p1 = pnand %p1667_p0, %p1661_p9 }
  0x65   : > { %1312 = vmatmul.mubr.msk.f32.gmra.mxu0 %vm404_vm1, %v364_v19  ;;  %391 = vperm.xlu0 %1569, %v371_v24  }
  0x66   : > { %505 = vmatprep.mubr.f32.mxu0 %v1765_v0 }
  0x69   : > { %1313 = vmatmul.mubr.msk.f32.gmra.mxu0 %vm404_vm1, %v365_v21  ;;  %396 = vperm.xlu0 %1569, %v372_v26  }
  0x6a   : > { %511 = vmatprep.mubr.f32.mxu0 %v1765_v0 }
  0x6d   : > { %1314 = vmatmul.mubr.msk.f32.gmra.mxu0 %vm404_vm1, %v366_v23  ;;  %401 = vperm.xlu0 %1569, %v373_v27  }
  0x6e   : > { %517 = vmatprep.mubr.f32.mxu0 %v1765_v0 }
  0x71   : > { %1315 = vmatmul.mubr.msk.f32.gmra.mxu0 %vm404_vm1, %v367_v25 }
  0xcf   : > { %v377_v28 = vpop.permute.xlu0 %376 }
  0xd4   : > { %v529_v29 = vpop.permute.xlu0 %528 }
  0xd8   : > { %v382_v35 = vpop.permute.xlu0 %381 }
  0xdc   : > { %v387_v43 = vpop.permute.xlu0 %386 }
 0x118   : > { %v600_v30 = vpop.f32.mrf.mxu1 }
 0x119   : > { %v601_v32 = vadd.f32 %v600_v30, %v529_v29 }
 0x11a   : > { %v1419_v34 = vpop.f32.mrf.mxu1 }
 0x11b   : > { %v606_v36 = vpack.c.bf16 %v601_v32, %v601_v32 }
 0x11d   : > { %v489_v31 = vpop.f32.mrf.mxu0  ;;  %v690_v39 = vsel %vm688_vm2, %v606_v36, 0  ;;  %1470 = vmatprep.subr.msk.bf16.mxu1 %vm688_vm2, %v606_v36 }
 0x11e   : > { %v490_v33 = vadd.f32 %v489_v31, %v377_v28  ;;  %1421 = vmatpush3.bf16.msra.mxu1 %v690_v39 }
 0x11f   : > { %v491_v37 = vpop.f32.mrf.mxu0 }
 0x120   : > { %v604_v38 = vpack.c.bf16 %v490_v33, %v490_v33  ;;  %v492_v51 = vadd.f32 %v491_v37, %v377_v28 }
 0x121   : > { %v495_v40 = vpop.f32.mrf.mxu0 }
 0x122   : > { %v2042_v41 = vadd.f32 %v495_v40, %v382_v35  ;;  %607 = vxpose.xlu1.c.b16.start.end [1/1] (short) %v604_v38, 128  ;;  %v605_v52 = vpack.c.bf16 %v492_v51, %v492_v51 }
 0x123   : > { %v497_v42 = vpop.f32.mrf.mxu0 }
 0x124   : > { %v498_v47 = vadd.f32 %v497_v42, %v382_v35 }
 0x125   : > { %v501_v44 = vpop.f32.mrf.mxu0 }
 0x126   : > { %v2044_v45 = vadd.f32 %v501_v44, %v387_v43 }
 0x127   : > { %v503_v46 = vpop.f32.mrf.mxu0 }
 0x128   : > { %v986_v48 = vpack.c.bf16 %v2044_v45, %v2042_v41  ;;  %v504_v49 = vadd.f32 %v503_v46, %v387_v43 }
 0x12a   : > { %v987_v50 = vpack.c.bf16 %v504_v49, %v498_v47 }
 0x12c   : > { %1024 = vmatprep.mubr.bf16.mxu0 %v987_v50 }
 0x13f   : > { %623 = vxpose.xlu1.c.b16.start.end [1/1] (short) %v605_v52, 128 }
 0x184   : > { %v615_v53 = vpop.trf.xlu1 }
 0x185   : > { %1422 = vmatprep.mubr.msk.bf16.mxu1 %vm639_vm3, %v615_v53 }
 0x188   : > { %v616_v54 = vpop.trf.xlu1 }
 0x189   : > { %1423 = vmatmul.mubr.msk.bf16.vlgmr.msra.gmra.mxu1 %vm639_vm3, %v616_v54 }
 0x18c   : > { %v617_v55 = vpop.trf.xlu1 }
 0x18d   : > { %1426 = vmatprep.mubr.msk.bf16.mxu1 %vm639_vm3, %v617_v55 }
 0x190   : > { %v618_v56 = vpop.trf.xlu1 }
 0x191   : > { %1427 = vmatmul.mubr.msk.bf16.gmra.mxu1 %vm639_vm3, %v618_v56 }
 0x194   : > { %v619_v57 = vpop.trf.xlu1 }
 0x195   : > { %1430 = vmatprep.mubr.msk.bf16.mxu1 %vm639_vm3, %v619_v57 }
 0x198   : > { %v620_v58 = vpop.trf.xlu1 }
 0x199   : > { %1431 = vmatmul.mubr.msk.bf16.gmra.mxu1 %vm639_vm3, %v620_v58 }
 0x19c   : > { %v621_v59 = vpop.trf.xlu1 }
 0x19d   : > { %1434 = vmatprep.mubr.msk.bf16.mxu1 %vm639_vm3, %v621_v59 }
 0x1a0   : > { %v622_v60 = vpop.trf.xlu1 }
 0x1a1   : > { %1435 = vmatmul.mubr.msk.bf16.gmra.mxu1 %vm639_vm3, %v622_v60 }
 0x1a4   : > { %v631_v61 = vpop.trf.xlu1 }
 0x1a5   : > { %1438 = vmatprep.mubr.msk.bf16.mxu1 %vm639_vm3, %v631_v61 }
 0x1a8   : > { %v632_v62 = vpop.trf.xlu1 }
 0x1a9   : > { %1439 = vmatmul.mubr.msk.bf16.gmra.mxu1 %vm639_vm3, %v632_v62 }
 0x1ac   : > { %v633_v63 = vpop.trf.xlu1 }
 0x1ad   : > { %1442 = vmatprep.mubr.msk.bf16.mxu1 %vm639_vm3, %v633_v63 }
 0x1b0   : > { %v634_v0 = vpop.trf.xlu1 }
 0x1b1   : > { %1443 = vmatmul.mubr.msk.bf16.gmra.mxu1 %vm639_vm3, %v634_v0 }
 0x1b4   : > { %v635_v1 = vpop.trf.xlu1 }
 0x1b5   : > { %1446 = vmatprep.mubr.msk.bf16.mxu1 %vm639_vm3, %v635_v1 }
 0x1b8   : > { %v636_v2 = vpop.trf.xlu1 }
 0x1b9   : > { %1447 = vmatmul.mubr.msk.bf16.gmra.mxu1 %vm639_vm3, %v636_v2 }
 0x1bc   : > { %v637_v3 = vpop.trf.xlu1 }
 0x1bd   : > { %1450 = vmatprep.mubr.msk.bf16.mxu1 %vm639_vm3, %v637_v3 }
 0x1c0   : > { %v638_v5 = vpop.trf.xlu1 }
 0x1c1   : > { %1451 = vmatmul.mubr.msk.bf16.gmra.mxu1 %vm639_vm3, %v638_v5 }
 0x249   : > { %v2064_v6 = vpop.f32.mrf.mxu1 }
 0x24b   : > { %v2066_v8 = vpop.f32.mrf.mxu1 }
 0x24d   : > { %v2068_v10 = vpop.f32.mrf.mxu1 }
 0x24f   : > { %v2070_v11 = vpop.f32.mrf.mxu1 }
 0x251   : > { %v2072_v13 = vpop.f32.mrf.mxu1 }
 0x252   : > { %v855_v36 = vmax.f32 %v2064_v6, %v2072_v13 }
 0x253   : > { %v2074_v14 = vpop.f32.mrf.mxu1 }
 0x254   : > { %v853_v37 = vmax.f32 %v2066_v8, %v2074_v14 }
 0x255   : > { %v2076_v15 = vpop.f32.mrf.mxu1 }
 0x256   : > { %v856_v34 = vmax.f32 %v2068_v10, %v2076_v15 }
 0x257   : > { %v2078_v16 = vpop.f32.mrf.mxu1 }
 0x258   : > { %v854_v38 = vmax.f32 %v2070_v11, %v2078_v16 }
 0x259   : > { %v2080_v17 = vpop.f32.mrf.mxu1 }
 0x25a   : > { %v859_v42 = vmax.f32 %v855_v36, %v2080_v17 }
 0x25b   : > { %v2082_v18 = vpop.f32.mrf.mxu1 }
 0x25c   : > { %v857_v43 = vmax.f32 %v853_v37, %v2082_v18 }
 0x25d   : > { %v2084_v19 = vpop.f32.mrf.mxu1 }
 0x25e   : > { %v860_v39 = vmax.f32 %v856_v34, %v2084_v19 }
 0x25f   : > { %v2086_v20 = vpop.f32.mrf.mxu1 }
 0x260   : > { %v858_v44 = vmax.f32 %v854_v38, %v2086_v20 }
 0x261   : > { %v2088_v21 = vpop.f32.mrf.mxu1 }
 0x262   : > { %v863_v49 = vmax.f32 %v859_v42, %v2088_v21 }
 0x263   : > { %v2090_v22 = vpop.f32.mrf.mxu1 }
 0x264   : > { %v861_v50 = vmax.f32 %v857_v43, %v2090_v22 }
 0x265   : > { %v2092_v23 = vpop.f32.mrf.mxu1 }
 0x266   : > { %v864_v46 = vmax.f32 %v860_v39, %v2092_v23 }
 0x267   : > { %v2094_v24 = vpop.f32.mrf.mxu1 }
 0x268   : > { %v862_v51 = vmax.f32 %v858_v44, %v2094_v24 }
 0x269   : > { %v1440_v25 = vpop.f32.mrf.mxu1 }
 0x26a   : > { %v867_v54 = vmax.f32 %v863_v49, %v1440_v25 }
 0x26b   : > { %v790_v26 = vpop.f32.mrf.mxu1 }
 0x26c   : > { %v865_v55 = vmax.f32 %v861_v50, %v790_v26 }
 0x26d   : > { %v1441_v27 = vpop.f32.mrf.mxu1 }
 0x26e   : > { %v868_v52 = vmax.f32 %v864_v46, %v1441_v27 }
 0x26f   : > { %v793_v28 = vpop.f32.mrf.mxu1 }
 0x270   : > { %v866_v56 = vmax.f32 %v862_v51, %v793_v28 }
 0x271   : > { %v2096_v29 = vpop.f32.mrf.mxu1 }
 0x272   : > { %v871_v59 = vmax.f32 %v867_v54, %v2096_v29 }
 0x273   : > { %v2098_v30 = vpop.f32.mrf.mxu1 }
 0x274   : > { %v869_v60 = vmax.f32 %v865_v55, %v2098_v30 }
 0x275   : > { %v2100_v31 = vpop.f32.mrf.mxu1 }
 0x276   : > { %v872_v57 = vmax.f32 %v868_v52, %v2100_v31 }
 0x277   : > { %v2102_v32 = vpop.f32.mrf.mxu1 }
 0x278   : > { %v870_v61 = vmax.f32 %v866_v56, %v2102_v32 }
 0x279   : > { %v2104_v33 = vpop.f32.mrf.mxu1 }
 0x27a   : > { %v875_v0 = vmax.f32 %v871_v59, %v2104_v33 }
 0x27b   : > { %v2108_v35 = vpop.f32.mrf.mxu1 }
 0x27c   : > { %v873_v1 = vmax.f32 %v869_v60, %v2108_v35 }
 0x27d   : > { %v2117_v40 = vpop.f32.mrf.mxu1 }
 0x27e   : > { %v876_v62 = vmax.f32 %v872_v57, %v2117_v40 }
 0x27f   : > { %v2123_v47 = vpop.f32.mrf.mxu1 }
 0x280   : > { %v874_v2 = vmax.f32 %v870_v61, %v2123_v47 }
 0x281   : > { %v1452_v53 = vpop.f32.mrf.mxu1 }
 0x282   : > { %v879_v34 = vmax.f32 %v875_v0, %v1452_v53 }
 0x283   : > { %v838_v58 = vpop.f32.mrf.mxu1 }
 0x284   : > { %v877_v36 = vmax.f32 %v873_v1, %v838_v58 }
 0x285   : > { %v1453_v63 = vpop.f32.mrf.mxu1 }
 0x286   : > { %v880_v3 = vmax.f32 %v876_v62, %v1453_v63 }
 0x287   : > { %v841_v5 = vpop.f32.mrf.mxu1 }
 0x288   : > { %v878_v37 = vmax.f32 %v874_v2, %v841_v5  ;;  %v882_v38 = vmax.f32 %v879_v34, %v880_v3 }
 0x28a   : > { %v881_v39 = vmax.f32 %v877_v36, %v878_v37 }
 0x28c   : > { %v883_v42 = vmax.f32 %v881_v39, %v882_v38 }
 0x28e   : > { %v884_v43 = vrot.slane %v883_v42, 4 }
 0x290   : > { %v885_v44 = vmax.f32 %v883_v42, %v884_v43 }
 0x292   : > { %v886_v46 = vrot.slane %v885_v44, 2 }
 0x294   : > { %v887_v49 = vmax.f32 %v885_v44, %v886_v46 }
 0x296   : > { %v888_v50 = vrot.slane %v887_v49, 1 }
 0x298   : > { %v2136_v51 = vmax.f32 %v887_v49, %v888_v50 }
 0x29a   : > { %v898_v52 = vsub.f32 %v2082_v18, %v2136_v51  ;;  %v899_v54 = vsub.f32 %v2086_v20, %v2136_v51  ;;  %v906_v55 = vsub.f32 %v790_v26, %v2136_v51  ;;  %v907_v56 = vsub.f32 %v793_v28, %v2136_v51 }
 0x29b   : > { %v908_v57 = vsub.f32 %v1440_v25, %v2136_v51  ;;  %v909_v59 = vsub.f32 %v1441_v27, %v2136_v51  ;;  %v904_v0 = vsub.f32 %v2088_v21, %v2136_v51  ;;  %v905_v18 = vsub.f32 %v2092_v23, %v2136_v51 }
 0x29c   : > { %v926_v60 = vpack.c.bf16 %v899_v54, %v898_v52  ;;  %v2146_v61 = vpack.c.bf16 %v907_v56, %v906_v55  ;;  %v920_v20 = vsub.f32 %v1452_v53, %v2136_v51  ;;  %v921_v26 = vsub.f32 %v1453_v63, %v2136_v51 }
 0x29d   : > { %v2148_v62 = vpack.c.bf16 %v909_v59, %v908_v57  ;;  %v918_v28 = vsub.f32 %v838_v58, %v2136_v51  ;;  %v919_v25 = vsub.f32 %v841_v5, %v2136_v51  ;;  %v929_v27 = vpack.c.bf16 %v905_v18, %v904_v0 }
 0x29e   : > { %v937_v1 = vpack.c.bf16 %v921_v26, %v920_v20  ;;  %v902_v3 = vsub.f32 %v2090_v22, %v2136_v51  ;;  %v903_v21 = vsub.f32 %v2094_v24, %v2136_v51  ;;  %v916_v23 = vsub.f32 %v2104_v33, %v2136_v51 }
 0x29f   : > { %v936_v2 = vpack.c.bf16 %v919_v25, %v918_v28  ;;  %v917_v53 = vsub.f32 %v2117_v40, %v2136_v51  ;;  %v960_v63 = vmul.bf16 1069105081, %v929_v27  ;;  %v900_v5 = vsub.f32 %v2080_v17, %v2136_v51 }
 0x2a0   : > { %v984_v34 = vmul.bf16 1069105081, %v937_v1  ;;  %v901_v36 = vsub.f32 %v2084_v19, %v2136_v51  ;;  %v928_v37 = vpack.c.bf16 %v903_v21, %v902_v3  ;;  %v914_v22 = vsub.f32 %v2108_v35, %v2136_v51 }
 0x2a1   : > { %v981_v58 = vmul.bf16 1069105081, %v936_v2  ;;  %v915_v24 = vsub.f32 %v2123_v47, %v2136_v51  ;;  %v935_v33 = vpack.c.bf16 %v917_v53, %v916_v23  ;;  %1570 = vpow.bf16 %v960_v63  ;;  %v392_v53 = vpop.permute.xlu0 %391 }
 0x2a2   : > { %1572 = vpow.bf16 %v984_v34  ;;  %v927_v40 = vpack.c.bf16 %v901_v36, %v900_v5  ;;  %v957_v38 = vmul.bf16 1069105081, %v928_v37  ;;  %v912_v39 = vsub.f32 %v2096_v29, %v2136_v51 }
 0x2a3   : > { %1574 = vpow.bf16 %v981_v58  ;;  %v913_v17 = vsub.f32 %v2100_v31, %v2136_v51  ;;  %v934_v19 = vpack.c.bf16 %v915_v24, %v914_v22  ;;  %v978_v42 = vmul.bf16 1069105081, %v935_v33 }
 0x2a4   : > { %v896_v35 = vsub.f32 %v2072_v13, %v2136_v51  ;;  %v897_v47 = vsub.f32 %v2076_v15, %v2136_v51  ;;  %v910_v43 = vsub.f32 %v2098_v30, %v2136_v51  ;;  %v954_v44 = vmul.bf16 1069105081, %v927_v40 }
 0x2a5   : > { %1576 = vpow.bf16 %v957_v38  ;;  %v911_v46 = vsub.f32 %v2102_v32, %v2136_v51  ;;  %v933_v29 = vpack.c.bf16 %v913_v17, %v912_v39  ;;  %v975_v49 = vmul.bf16 1069105081, %v934_v19  ;;  %v397_v37 = vpop.permute.xlu0 %396 }
 0x2a6   : > { %1578 = vpow.bf16 %v978_v42  ;;  %v894_v31 = vsub.f32 %v2074_v14, %v2136_v51  ;;  %v895_v13 = vsub.f32 %v2078_v16, %v2136_v51  ;;  %v925_v50 = vpack.c.bf16 %v897_v47, %v896_v35 }
 0x2a7   : > { %v951_v52 = vmul.bf16 1069105081, %v926_v60  ;;  %1580 = vpow.bf16 %v954_v44  ;;  %v932_v15 = vpack.c.bf16 %v911_v46, %v910_v43  ;;  %v972_v54 = vmul.bf16 1069105081, %v933_v29  ;;  %v1049_v29 = vld [vmem:[#allocation5] sm:$0xff] }
 0x2a8   : > { %1582 = vpow.bf16 %v975_v49  ;;  %v892_v30 = vsub.f32 %v2064_v6, %v2136_v51  ;;  %v893_v32 = vsub.f32 %v2068_v10, %v2136_v51  ;;  %v924_v56 = vpack.c.bf16 %v895_v13, %v894_v31 }
 0x2a9   : > { %v948_v57 = vmul.bf16 1069105081, %v925_v50  ;;  %1584 = vpow.bf16 %v951_v52  ;;  %v969_v59 = vmul.bf16 1069105081, %v932_v15  ;;  %v890_v60 = vsub.f32 %v2066_v8, %v2136_v51  ;;  %v402_v17 = vpop.permute.xlu0 %401 }
 0x2aa   : > { %1586 = vpow.bf16 %v972_v54  ;;  %v891_v0 = vsub.f32 %v2070_v11, %v2136_v51  ;;  %v923_v6 = vpack.c.bf16 %v893_v32, %v892_v30  ;;  %v945_v18 = vmul.bf16 1069105081, %v924_v56 }
 0x2ab   : > { %1588 = vpow.bf16 %v948_v57  ;;  %v966_v10 = vmul.bf16 1069105081, %v2148_v62  ;;  %v963_v8 = vmul.bf16 1069105081, %v2146_v61  ;;  %v507_v62 = vpop.f32.mrf.mxu0 }
 0x2ac   : > { %1590 = vpow.bf16 %v969_v59  ;;  %v922_v28 = vpack.c.bf16 %v891_v0, %v890_v60  ;;  %v942_v25 = vmul.bf16 1069105081, %v923_v6  ;;  %v508_v35 = vadd.f32 %v507_v62, %v392_v53  ;;  %v1051_v60 = vld [vmem:[#allocation5 + $0x10] sm:$0xff]  ;;  %v1052_v0 = vld [vmem:[#allocation5 + $0x18] sm:$0xff] }
 0x2ad   : > { %1592 = vpow.bf16 %v945_v18  ;;  %v509_v21 = vpop.f32.mrf.mxu0  ;;  %v1155_v6 = vlaneseq }
 0x2ae   : > { %1594 = vpow.bf16 %v966_v10  ;;  %v939_v11 = vmul.bf16 1069105081, %v922_v28  ;;  %v510_v40 = vadd.f32 %v509_v21, %v392_v53 }
 0x2af   : > { %v1571_v55 = vpop.eup %1570  ;;  %1596 = vpow.bf16 %v942_v25  ;;  %v513_v63 = vpop.f32.mrf.mxu0  ;;  %v1156_v18 = vshrl.u32 %v1155_v6, 7 }
 0x2b0   : > { %v1573_v14 = vpop.eup %1572  ;;  %1598 = vpow.bf16 %v963_v8  ;;  %v514_v19 = vadd.f32 %v513_v63, %v397_v37 }
 0x2b1   : > { %v1575_v16 = vpop.eup %1574  ;;  %1366 = vmatprep.subr.bf16.mxu0 %v1573_v14  ;;  %1600 = vpow.bf16 %v939_v11  ;;  %v515_v5 = vpop.f32.mrf.mxu0  ;;  %v1157_v10 = vsub.s32 0, %v1156_v18 }
 0x2b2   : > { %1367 = vmatpush3.bf16.msra.mxu0 %v1571_v55  ;;  %v516_v22 = vadd.f32 %v515_v5, %v397_v37  ;;  %v988_v47 = vpack.c.bf16 %v514_v19, %v508_v35 }
 0x2b3   : > { %1368 = vmatprep.subr.bf16.mxu0 %v1575_v16  ;;  %v1577_v20 = vpop.eup %1576  ;;  %v519_v33 = vpop.f32.mrf.mxu0  ;;  %v1050_v16 = vld [vmem:[#allocation5 + $0x8] sm:$0xff] }
 0x2b4   : > { %v1579_v26 = vpop.eup %1578  ;;  %v989_v38 = vpack.c.bf16 %v516_v22, %v510_v40  ;;  %v520_v44 = vadd.f32 %v519_v33, %v402_v17 }
 0x2b5   : > { %v1581_v27 = vpop.eup %1580  ;;  %v521_v39 = vpop.f32.mrf.mxu0 }
 0x2b6   : > { %1369 = vmatpush3.bf16.msra.mxu0 %v1577_v20  ;;  %v1583_v1 = vpop.eup %1582  ;;  %v522_v42 = vadd.f32 %v521_v39, %v402_v17  ;;  %v990_v46 = vpack.c.bf16 %v520_v44, %v520_v44 }
 0x2b7   : > { %1370 = vmatprep.subr.bf16.mxu0 %v1579_v26  ;;  %v1585_v51 = vpop.eup %1584 }
 0x2b8   : > { %v1587_v2 = vpop.eup %1586  ;;  %v991_v43 = vpack.c.bf16 %v522_v42, %v522_v42 }
 0x2b9   : > { %v1589_v3 = vpop.eup %1588 }
 0x2ba   : > { %1371 = vmatpush3.bf16.msra.mxu0 %v1581_v27  ;;  %v1591_v23 = vpop.eup %1590 }
 0x2bb   : > { %1372 = vmatprep.subr.bf16.mxu0 %v1583_v1  ;;  %v1593_v61 = vpop.eup %1592 }
 0x2bc   : > { %v1595_v34 = vpop.eup %1594 }
 0x2bd   : > { %v1597_v58 = vpop.eup %1596 }
 0x2be   : > { %1373 = vmatpush3.bf16.msra.mxu0 %v1585_v51  ;;  %v1599_v36 = vpop.eup %1598 }
 0x2bf   : > { %1374 = vmatprep.subr.bf16.mxu0 %v1587_v2  ;;  %v1601_v24 = vpop.eup %1600 }
 0x2c2   : > { %1375 = vmatpush3.bf16.msra.mxu0 %v1589_v3 }
 0x2c3   : > { %1376 = vmatprep.subr.bf16.mxu0 %v1591_v23 }
 0x2c6   : > { %1377 = vmatpush3.bf16.msra.mxu0 %v1593_v61 }
 0x2c7   : > { %1378 = vmatprep.subr.bf16.mxu0 %v1595_v34 }
 0x2ca   : > { %1379 = vmatpush3.bf16.msra.mxu0 %v1597_v58 }
 0x2cb   : > { %1380 = vmatprep.subr.bf16.mxu0 %v1599_v36 }
 0x2ce   : > { %1381 = vmatpush3.bf16.msra.mxu0 %v1601_v24 }
 0x2d1   : > { %1025 = vmatmul.mubr.bf16.vlgmr.msra.gmra.mxu0 %v986_v48 }
 0x2d2   : > { %1032 = vmatprep.mubr.bf16.mxu0 %v989_v38 }
 0x2d9   : > { %1033 = vmatmul.mubr.bf16.gmra.mxu0 %v988_v47 }
 0x2da   : > { %1040 = vmatprep.mubr.bf16.mxu0 %v991_v43 }
 0x2e1   : > { %1041 = vmatmul.mubr.bf16.gmra.mxu0 %v990_v46 }
 0x2e2   : > { %1464 = vmatprep.mubr.msk.f32.mxu0 %vm1053_vm4, %v1049_v29 }
 0x391   : > { %v1382_v49 = vpop.f32.mrf.mxu0 }
 0x393   : > { %v1383_v31 = vpop.f32.mrf.mxu0 }
 0x394   : > { %v1384_v59 = vadd.f32 %v1383_v31, %v1382_v49 }
 0x395   : > { %v1385_v41 = vpop.f32.mrf.mxu0 }
 0x397   : > { %v1386_v45 = vpop.f32.mrf.mxu0 }
 0x398   : > { %v1387_v14 = vadd.f32 %v1386_v45, %v1385_v41 }
 0x399   : > { %v1388_v48 = vpop.f32.mrf.mxu0 }
 0x39b   : > { %v1389_v13 = vpop.f32.mrf.mxu0 }
 0x39c   : > { %v1390_v57 = vadd.f32 %v1389_v13, %v1388_v48 }
 0x39d   : > { %v1391_v50 = vpop.f32.mrf.mxu0 }
 0x39f   : > { %v1392_v52 = vpop.f32.mrf.mxu0 }
 0x3a0   : > { %v1393_v32 = vadd.f32 %v1392_v52, %v1391_v50 }
 0x3a1   : > { %v1394_v15 = vpop.f32.mrf.mxu0 }
 0x3a3   : > { %v1395_v54 = vpop.f32.mrf.mxu0 }
 0x3a4   : > { %v1396_v30 = vadd.f32 %v1395_v54, %v1394_v15 }
 0x3a5   : > { %v1397_v55 = vpop.f32.mrf.mxu0 }
 0x3a6   : > { %1454 = vmatprep.subr.msk.mxu0 %vm1066_vm5, %v1396_v30  ;;  %1602 = vrcp.f32 %v1396_v30 }
 0x3a7   : > { %v1398_v56 = vpop.f32.mrf.mxu0  ;;  %1455 = vmatpush3.msk.msra.mxu0 %vm1066_vm5, %v1396_v30 }
 0x3a8   : > { %1456 = vmatprep.subr.mxu0 %v1393_v32 }
 0x3a9   : > { %1457 = vmatpush3.msra.mxu0 %v1393_v32 }
 0x3aa   : > { %1458 = vmatprep.subr.mxu0 %v1390_v57 }
 0x3ab   : > { %1459 = vmatpush3.msra.mxu0 %v1390_v57 }
 0x3ac   : > { %1460 = vmatprep.subr.mxu0 %v1387_v14 }
 0x3ad   : > { %1461 = vmatpush3.msra.mxu0 %v1387_v14 }
 0x3ae   : > { %1462 = vmatprep.subr.mxu0 %v1384_v59 }
 0x3af   : > { %1463 = vmatpush3.msra.mxu0 %v1384_v59 }
 0x3b0   : > { %1465 = vmatmul.mubr.msk.f32.vlgmr.msra.gmra.mxu0 %vm1053_vm4, %v1050_v16 }
 0x3b1   : > { %1467 = vmatprep.mubr.msk.f32.mxu0 %vm1053_vm4, %v1051_v60 }
 0x3b3   : > { %v1603_v20 = vpop.eup %1602 }
 0x3b4   : > { %1468 = vmatmul.mubr.msk.f32.gmra.mxu0 %vm1053_vm4, %v1052_v0  ;;  %v1158_v26 = vrot.slane %v1603_v20, %v1157_v10 }
 0x470   : > { %v1466_v28 = vpop.f32.mrf.mxu0 }
 0x471   : > { %v1160_v25 = vmul.f32 %v1466_v28, %v1158_v26 }
 0x472   : > { %v1136_v8 = vpop.f32.mrf.mxu0 }
 0x473   : > { %v1164_v27 = vadd.f32 %v1160_v25, %v1978_v9  ;;  %v1159_v1 = vmul.f32 %v1158_v26, %v1136_v8 }
 0x474   : > { %v1469_v11 = vpop.f32.mrf.mxu0 }
 0x475   : > { %1168 = vst [vmem:[%s343_s12 + $0x8] sm:$0xff] %v1164_v27  ;;  %v1163_v51 = vadd.f32 %v1159_v1, %v1983_v12  ;;  %v1162_v62 = vmul.f32 %v1469_v11, %v1158_v26 }
 0x476   : > { %v1146_v2 = vpop.f32.mrf.mxu0 }
 0x477   : > { %1167 = vst [vmem:[%s343_s12] sm:$0xff] %v1163_v51  ;;  %v1166_v9 = vadd.f32 %v1162_v62, %v1970_v4  ;;  %v1161_v3 = vmul.f32 %v1158_v26, %v1146_v2 }
 0x479   : > { %1170 = vst [vmem:[%s343_s12 + $0x18] sm:$0xff] %v1166_v9  ;;  %v1165_v12 = vadd.f32 %v1161_v3, %v1974_v7 }
 0x47b   : > { %1169 = vst [vmem:[%s343_s12 + $0x10] sm:$0xff] %v1165_v12 }
 0x47c   : > { %1671 = shalt.err (!%p1668_p1)
}
 0x47d   : > { %s1672_s11 = scalar_lea.hbm %s2219_s19, 512  ;;  %s1676_s20 = scalar_lea.hbm %s2320_s10, 2048 }
 0x47e   : > { %p1673_p4 = scmp.ne.s32.totalorder %s2219_s19, %s1672_s11  ;;  %p1677_p11 = scmp.lt.s32.totalorder %s2219_s19, %s2320_s10 }
 0x47f   : > { %p1678_p2 = scmp.lt.s32.totalorder %s1676_s20, %s1672_s11 }
 0x480   : > { %p1674_p6 = pnand %p1673_p4, %p2321_p7 }
 0x481   : > { %p1679_p5 = por %p1678_p2, %p1677_p11 }
 0x482   : > { %p1675_p10 = pneg %p1674_p6 }
 0x484   : > { %p1680_p3 = pnand %p1679_p5, %p1675_p10 }
 0x486   : > { %1683 = shalt.err (!%p1680_p3)
}
 0x487   : > { %s1769_s12 = smov 128   ;;  %s1770_s17 = smov 256  }
 0x488   : > { %s1771_s28 = smov 8  }
 0x489   : > { %1477 = dma.vmem_to_hbm [thread:$0]  (%p2321_p7), %s2213_s14, 512, %s2219_s19, %s1172_s13, %s1769_s12, %s1770_s17, %s1771_s28  }
 0x48a PF: > { %s2322_s21 = sld [smem:[#allocation14_spill]] }
 0x48b   : > { %s2323_s16 = sld [smem:[#allocation11_spill]] }
 0x48c   : > { %s2324_s8 = sld [smem:[#allocation16_spill]] }
 0x490   : > { %p1494_p8 = scmp.ge.s32.totalorder %s2322_s21, 2 }
 0x491   : > { %s1201_s6 = sand.u32 1, %s2323_s16  }
 0x492   : > { %p2325_p9 = scmp.ne.s32.totalorder %s2324_s8, 0  ;;  %s1202_s24 = scalar_lea.sflag [#allocation4], %s1201_s6 }
 0x494   : > { %p1488_p12 = pnand %p1494_p8, %p2325_p9 }
 0x496   : > { %p1489_p13 = pneg %p1488_p12 }
 0x498   : > { %1725 = dma.done.wait (%p1489_p13), %s1202_s24, 512  }
 0x499   : > { %1727 = vsyncadd (%p1489_p13), %s1202_s24, 4294966784  ;;  %s24_s8 = sadd.s32 1, %s2322_s21   ;;  %s2326_s27 = sld [smem:[#allocation13_spill]] }
 0x49a   : > { %p21_p0 = scmp.ge.s32.totalorder %s24_s8, 6   ;;  %s2327_s29 = sld [smem:[#allocation17_spill]] }
 0x49b   : > { %s2328_s24 = smov %s1734_s25  ;;  %s2329_s25 = smov %s1738_s26 }
 0x49c   : > { %s2330_s26 = smov %s1940_s9  ;;  %s2331_s28 = smov %s1754_s30 }
 0x49d   : > { %s2332_s30 = smov %s2338_s22  ;;  %23 = sbr.rel (!%p21_p0) target bundleno = 11 (0xb), region = 100 }
 0x4a2   :  { %1207 = vsyncpa [#allocation3], 1 }
 0x4a3   :  { %1209 = vsyncpa [#allocation3 + $0x1], 1 }
 0x4a4   :  { %1210 = vsyncpa [#allocation6], 1 }
 0x4a5   :  { %1211 = vsyncpa [#allocation4], 1 }
 0x4a6   :  { %1213 = vsyncpa [#allocation4 + $0x1], 1 }

</bundles_post_ra>
